<compile_context>
chip_gen: v7x
topology: tpu7x:2x2x1
jax: 0.10.0
libtpu: 0.0.40
codegen_flags: <defaults>
</compile_context>

<pallas_src>
import functools
import math

import jax
import jax.numpy as jnp
import numpy as np
from jax import lax
from jax.experimental import pallas as pl
from jax.experimental.pallas import tpu as pltpu


_ENERGY_CHUNK_BUDGET_BYTES = 2 * 1024 * 1024  # cap on the live f32 energy chunk


# ---------------------------------------------------------------------------
# Kernel
# ---------------------------------------------------------------------------
def attention_kernel(hidden_ref, enc_ref, w1t_ref, w2t_ref, b_ref, v_ref,
                     out_ref, scores_ref, *, t_chunk):
    T, TB, H = enc_ref.shape

    # Hidden projection + bias: once per batch tile (MXU, f32 accumulation).
    h_proj = (jnp.dot(hidden_ref[...], w1t_ref[...],
                      preferred_element_type=jnp.float32)
              + b_ref[...])                                         # (TB, H) f32

    w2t = w2t_ref[...]                                              # (H, H)
    v_row = v_ref[...].reshape(1, 1, H)                             # (1,1,H) f32

    n_chunks = T // t_chunk

    def body(c, carry):
        t0 = pl.multiple_of(c * t_chunk, t_chunk)
        enc_c = enc_ref[pl.ds(t0, t_chunk), :, :]                   # (t_chunk, TB, H)
        e_proj = jnp.dot(enc_c.reshape(t_chunk * TB, H), w2t,
                         preferred_element_type=jnp.float32)        # MXU
        energy = jnp.maximum(
            e_proj.reshape(t_chunk, TB, H) + h_proj[None, :, :], 0.0)
        # v-contraction on VPU multiply + XLU lane-reduce (leaves the MXU free).
        scores_ref[pl.ds(t0, t_chunk), :] = jnp.sum(energy * v_row, axis=-1)
        return carry

    lax.fori_loop(0, n_chunks, body, 0, unroll=(n_chunks <= 16))

    # Softmax over the time axis (torch dim=1 of (B, T)); exact normalization so
    # rows sum to 1. The (T, TB) -> (TB, T) transpose is tiny (XLU).
    scores = scores_ref[...].T                                      # (TB, T)
    m = jnp.max(scores, axis=-1, keepdims=True)
    e = jnp.exp(scores - m)
    denom = jnp.sum(e, axis=-1, keepdims=True)
    out_ref[...] = (e / denom).astype(out_ref.dtype)


# ---------------------------------------------------------------------------
# Sizing helpers
# ---------------------------------------------------------------------------
def _vmem_budget_bytes():
    """~3/4 of physical VMEM, capped at 96 MiB (=> ~48 MiB on v7x, 96 MiB v5e/v6e)."""
    cap = 64 * 1024 * 1024  # conservative fallback (v7x physical)
    try:
        info = pltpu.get_tpu_info()
        cap = int(getattr(info, "vmem_capacity_bytes", cap))
    except Exception:
        pass
    return min(cap * 3 // 4, 96 * 1024 * 1024)


def _pick_tile_b(B, T, H, in_bytes, budget_bytes, min_grid=4):
    """Largest batch tile whose working set fits the VMEM budget; prefer >=min_grid steps."""

    def fits(tb):
        enc = 2 * T * tb * H * in_bytes              # double-buffered enc block
        hid = 2 * tb * H * in_bytes                  # double-buffered hidden block
        out = 2 * tb * T * 4                         # double-buffered output block
        wts = 2 * (2 * H * H * in_bytes) + 2 * (2 * H * 4)   # w1t/w2t + bias/v
        scr = T * tb * 4 + _ENERGY_CHUNK_BUDGET_BYTES        # scores scratch + energy chunk
        return enc + hid + out + wts + scr <= budget_bytes

    # tile_b must be a multiple of 8 or the full batch extent (the (8,128) rule).
    cands = sorted({B} | {c for c in range(8, B + 1, 8) if B % c == 0}, reverse=True)
    fitting = [c for c in cands if fits(c)]
    if not fitting:
        return cands[-1]                             # best effort: smallest legal tile
    preferred = [c for c in fitting if B // c >= min_grid]
    return preferred[0] if preferred else fitting[0]


def _pick_t_chunk(T, tile_b, H, budget_bytes=_ENERGY_CHUNK_BUDGET_BYTES):
    """Largest divisor of T whose f32 energy chunk stays under budget."""
    per_t = tile_b * H * 4
    best = 1
    for c in range(1, T + 1):
        if T % c == 0 and c * per_t <= budget_bytes:
            best = c
    return best


# ---------------------------------------------------------------------------
# Wrappers
# ---------------------------------------------------------------------------
def prepare_attention_params(weight, bias, v, *, use_bf16=False):
    """Split/transpose/cast the weights once (hoist out of the per-call hot path)."""
    H = bias.shape[0]
    w1t = jnp.transpose(weight[:, :H])               # (H, H) hidden part of the Linear
    w2t = jnp.transpose(weight[:, H:])               # (H, H) encoder part of the Linear
    if use_bf16:
        w1t = w1t.astype(jnp.bfloat16)
        w2t = w2t.astype(jnp.bfloat16)
    bias2 = bias.reshape(1, H).astype(jnp.float32)
    v_row = v.reshape(1, H).astype(jnp.float32)
    return w1t, w2t, bias2, v_row


def attention_forward_prepared(hidden, encoder_outputs, w1t, w2t, bias2, v_row, *,
                               use_bf16=False, tile_b=None):
    """hidden: (B, H), encoder_outputs: (T, B, H). Returns (B, 1, T) float32."""
    T, B, H = encoder_outputs.shape
    in_dtype = jnp.bfloat16 if use_bf16 else jnp.float32
    in_bytes = 2 if use_bf16 else 4

    # bf16 MXU inputs are fine on every generation (v5e included): only the matmul
    # operands are bf16; accumulation and all elementwise math stay f32.
    hidden = hidden.astype(in_dtype)
    enc = encoder_outputs.astype(in_dtype)           # native (T, B, H); no transpose

    budget = _vmem_budget_bytes()
    if tile_b is None:
        tile_b = _pick_tile_b(B, T, H, in_bytes, budget)
    assert B % tile_b == 0 and (tile_b % 8 == 0 or tile_b == B)
    t_chunk = _pick_t_chunk(T, tile_b, H)
    grid = (B // tile_b,)

    kernel = functools.partial(attention_kernel, t_chunk=t_chunk)

    cost = pl.CostEstimate(
        flops=2 * B * T * (2 * H) * H + 3 * B * T * H,
        transcendentals=B * T,
        bytes_accessed=(T * B * H * in_bytes + B * H * in_bytes
                        + 2 * H * H * in_bytes + B * T * 4),
    )

    attn = pl.pallas_call(
        kernel,
        out_shape=jax.ShapeDtypeStruct((B, T), jnp.float32),
        grid=grid,
        in_specs=[
            pl.BlockSpec((tile_b, H), lambda b: (b, 0)),        # hidden  (streamed)
            pl.BlockSpec((T, tile_b, H), lambda b: (0, b, 0)),  # enc     (streamed, native T-B-H)
            pl.BlockSpec((H, H), lambda b: (0, 0)),             # w1t     (resident)
            pl.BlockSpec((H, H), lambda b: (0, 0)),             # w2t     (resident)
            pl.BlockSpec((1, H), lambda b: (0, 0)),             # bias    (resident)
            pl.BlockSpec((1, H), lambda b: (0, 0)),             # v       (resident)
        ],
        out_specs=pl.BlockSpec((tile_b, T), lambda b: (b, 0)),  # lane-dense 2-D output
        scratch_shapes=[pltpu.VMEM((T, tile_b), jnp.float32)],  # scores scratch
        compiler_params=pltpu.CompilerParams(
            dimension_semantics=("parallel",),
            vmem_limit_bytes=int(budget),
        ),
        cost_estimate=cost,
    )(hidden, enc, w1t, w2t, bias2, v_row)

    return attn[:, None, :]                                     # (B, 1, T)


def attention_forward(hidden, encoder_outputs, weight, bias, v, *, use_bf16=False,
                      tile_b=None):
    params = prepare_attention_params(weight, bias, v, use_bf16=use_bf16)
    return attention_forward_prepared(hidden, encoder_outputs, *params,
                                      use_bf16=use_bf16, tile_b=tile_b)


def attention_reference(hidden, encoder_outputs, weight, bias, v):
    """Pure-JAX replica of the PyTorch forward for verification."""
    T, B, H = encoder_outputs.shape
    h = jnp.broadcast_to(hidden[None, :, :], (T, B, H)).transpose(1, 0, 2)       # (B, T, H)
    enc = encoder_outputs.transpose(1, 0, 2)                                     # (B, T, H)
    cat = jnp.concatenate([h, enc], axis=2)                                      # (B, T, 2H)
    energy = jax.nn.relu(jnp.einsum('btj,kj->btk', cat, weight) + bias)          # (B, T, H)
    scores = jnp.einsum('k,btk->bt', v, energy)                                  # (B, T)
    return jax.nn.softmax(scores, axis=1)[:, None, :]                            # (B, 1, T)


if __name__ == "__main__":
    H = 32   # hidden_size
    T = 8    # timesteps (encoder_outputs.size(0))
    B = 2    # batch

    key = jax.random.PRNGKey(0)
    k_w, k_b, k_v, k_h, k_e = jax.random.split(key, 5)

    # nn.Linear(2H, H): weight (H, 2H), bias (H,), init U(-1/sqrt(2H), 1/sqrt(2H))
    stdv_lin = 1.0 / math.sqrt(2 * H)
    weight = jax.random.uniform(k_w, (H, 2 * H), jnp.float32, -stdv_lin, stdv_lin)
    bias = jax.random.uniform(k_b, (H,), jnp.float32, -stdv_lin, stdv_lin)
    # v: Parameter(H,), init U(-1/sqrt(H), 1/sqrt(H))
    stdv_v = 1.0 / math.sqrt(H)
    v = jax.random.uniform(k_v, (H,), jnp.float32, -stdv_v, stdv_v)

    hidden = jax.random.normal(k_h, (B, H), jnp.float32)
    encoder_outputs = jax.random.normal(k_e, (T, B, H), jnp.float32)

    ref = attention_reference(hidden, encoder_outputs, weight, bias, v)

    # f32 MXU path: exact softmax normalization -> tight check.
    out_f32 = jax.block_until_ready(
        attention_forward(hidden, encoder_outputs, weight, bias, v, use_bf16=False))
    assert out_f32.shape == (B, 1, T)
    np.testing.assert_allclose(np.asarray(out_f32), np.asarray(ref),
                               rtol=1e-5, atol=1e-5)

    # bf16 MXU-input path (valid on v5e/v6e/v7x): loose check.
    out_bf16 = jax.block_until_ready(
        attention_forward(hidden, encoder_outputs, weight, bias, v, use_bf16=True))
    assert out_bf16.shape == (B, 1, T)
    np.testing.assert_allclose(np.asarray(out_bf16), np.asarray(ref),
                               rtol=0.0, atol=5e-2)

    print("KERNEL_OK")
</pallas_src>

<mosaic_0001>
module attributes {stable_mosaic.version = 11 : i64} {
  func.func @attention_kernel(%arg0: i32, %arg1: memref<2x32xf32, #tpu.memory_space<vmem>>, %arg2: memref<8x2x32xf32, #tpu.memory_space<vmem>>, %arg3: memref<32x32xf32, #tpu.memory_space<vmem>>, %arg4: memref<32x32xf32, #tpu.memory_space<vmem>>, %arg5: memref<1x32xf32, #tpu.memory_space<vmem>>, %arg6: memref<1x32xf32, #tpu.memory_space<vmem>>, %arg7: memref<2x8xf32, #tpu.memory_space<vmem>>, %arg8: memref<8x2xf32, #tpu.memory_space<vmem>>) attributes {dimension_semantics = [#tpu.dimension_semantics<parallel>], iteration_bounds = array<i64: 1>, scalar_prefetch = 0 : i64, scratch_operands = 1 : i64, tpu.core_type = #tpu.core_type<tc>, window_params = [{transform_indices = @transform_0, window_bounds = array<i64: 2, 32>}, {transform_indices = @transform_1, window_bounds = array<i64: 8, 2, 32>}, {pipeline_mode = #tpu.pipeline_mode<synchronous>, transform_indices = @transform_2, window_bounds = array<i64: 32, 32>}, {pipeline_mode = #tpu.pipeline_mode<synchronous>, transform_indices = @transform_3, window_bounds = array<i64: 32, 32>}, {pipeline_mode = #tpu.pipeline_mode<synchronous>, transform_indices = @transform_4, window_bounds = array<i64: 1, 32>}, {pipeline_mode = #tpu.pipeline_mode<synchronous>, transform_indices = @transform_5, window_bounds = array<i64: 1, 32>}, {transform_indices = @transform_6, window_bounds = array<i64: 2, 8>}]} {
    %c0 = arith.constant 0 : index
    %c0_0 = arith.constant 0 : index
    %0 = vector.load %arg1[%c0, %c0_0] : memref<2x32xf32, #tpu.memory_space<vmem>>, vector<2x32xf32>
    %c0_1 = arith.constant 0 : index
    %c0_2 = arith.constant 0 : index
    %1 = vector.load %arg3[%c0_1, %c0_2] : memref<32x32xf32, #tpu.memory_space<vmem>>, vector<32x32xf32>
    %cst = arith.constant dense<0.000000e+00> : vector<2x32xf32>
    %2 = tpu.matmul %0, %1, %cst {dimension_numbers = #tpu.dot_dimension_numbers<[1], [0], [0], [1], [0, 0, 1, 1], [], []>} : vector<2x32xf32>, vector<32x32xf32>, vector<2x32xf32> -> vector<2x32xf32>
    %c0_3 = arith.constant 0 : index
    %c0_4 = arith.constant 0 : index
    %3 = vector.load %arg5[%c0_3, %c0_4] : memref<1x32xf32, #tpu.memory_space<vmem>>, vector<1x32xf32>
    %4 = vector.broadcast %3 : vector<1x32xf32> to vector<2x32xf32>
    %5 = arith.addf %2, %4 : vector<2x32xf32>
    %c0_5 = arith.constant 0 : index
    %c0_6 = arith.constant 0 : index
    %6 = vector.load %arg4[%c0_5, %c0_6] : memref<32x32xf32, #tpu.memory_space<vmem>>, vector<32x32xf32>
    %c0_7 = arith.constant 0 : index
    %c0_8 = arith.constant 0 : index
    %7 = vector.load %arg6[%c0_7, %c0_8] : memref<1x32xf32, #tpu.memory_space<vmem>>, vector<1x32xf32>
    %8 = vector.shape_cast %7 : vector<1x32xf32> to vector<1x1x32xf32>
    %c0_i32 = arith.constant 0 : i32
    %c8_i32 = arith.constant 8 : i32
    %9 = arith.muli %c0_i32, %c8_i32 : i32
    %10 = tpu.assume_multiple %9, 8 : i32
    %11 = arith.index_cast %10 : i32 to index
    %c0_9 = arith.constant 0 : index
    %c0_10 = arith.constant 0 : index
    %12 = vector.load %arg2[%11, %c0_9, %c0_10] : memref<8x2x32xf32, #tpu.memory_space<vmem>>, vector<8x2x32xf32>
    %13 = vector.shape_cast %12 : vector<8x2x32xf32> to vector<16x32xf32>
    %cst_11 = arith.constant dense<0.000000e+00> : vector<16x32xf32>
    %14 = tpu.matmul %13, %6, %cst_11 {dimension_numbers = #tpu.dot_dimension_numbers<[1], [0], [0], [1], [0, 0, 1, 1], [], []>} : vector<16x32xf32>, vector<32x32xf32>, vector<16x32xf32> -> vector<16x32xf32>
    %15 = vector.shape_cast %14 : vector<16x32xf32> to vector<8x2x32xf32>
    %16 = vector.shape_cast %5 : vector<2x32xf32> to vector<1x2x32xf32>
    %17 = vector.broadcast %16 : vector<1x2x32xf32> to vector<8x2x32xf32>
    %18 = arith.addf %15, %17 : vector<8x2x32xf32>
    %cst_12 = arith.constant 0.000000e+00 : f32
    %19 = vector.broadcast %cst_12 : f32 to vector<8x2x32xf32>
    %20 = arith.maximumf %18, %19 : vector<8x2x32xf32>
    %21 = vector.broadcast %8 : vector<1x1x32xf32> to vector<8x2x32xf32>
    %22 = arith.mulf %20, %21 : vector<8x2x32xf32>
    %cst_13 = arith.constant dense<0.000000e+00> : vector<8x2xf32>
    %23 = vector.multi_reduction <add>, %22, %cst_13 [2] : vector<8x2x32xf32> to vector<8x2xf32>
    %24 = arith.index_cast %10 : i32 to index
    %c0_14 = arith.constant 0 : index
    %25 = vector.load %arg8[%24, %c0_14] : memref<8x2xf32, #tpu.memory_space<vmem>>, vector<8x2xf32>
    tpu.vector_store %arg8[%24, %c0_14], %23 {strides = array<i32>} : memref<8x2xf32, #tpu.memory_space<vmem>>, vector<8x2xf32>,
    %c1_i32 = arith.constant 1 : i32
    %c0_15 = arith.constant 0 : index
    %c0_16 = arith.constant 0 : index
    %26 = vector.load %arg8[%c0_15, %c0_16] : memref<8x2xf32, #tpu.memory_space<vmem>>, vector<8x2xf32>
    %27 = tpu.transpose %26, [1, 0] : vector<8x2xf32> -> vector<2x8xf32>
    %cst_17 = arith.constant dense<0xFF800000> : vector<2xf32>
    %28 = vector.multi_reduction <maximumf>, %27, %cst_17 [1] : vector<2x8xf32> to vector<2xf32>
    %29 = vector.shape_cast %28 : vector<2xf32> to vector<2x1xf32>
    %30 = vector.broadcast %29 : vector<2x1xf32> to vector<2x8xf32>
    %31 = arith.subf %27, %30 : vector<2x8xf32>
    %32 = math.exp %31 : vector<2x8xf32>
    %cst_18 = arith.constant dense<0.000000e+00> : vector<2xf32>
    %33 = vector.multi_reduction <add>, %32, %cst_18 [1] : vector<2x8xf32> to vector<2xf32>
    %34 = vector.shape_cast %33 : vector<2xf32> to vector<2x1xf32>
    %35 = vector.broadcast %34 : vector<2x1xf32> to vector<2x8xf32>
    %36 = arith.divf %32, %35 : vector<2x8xf32>
    %c0_19 = arith.constant 0 : index
    %c0_20 = arith.constant 0 : index
    %37 = vector.load %arg7[%c0_19, %c0_20] : memref<2x8xf32, #tpu.memory_space<vmem>>, vector<2x8xf32>
    tpu.vector_store %arg7[%c0_19, %c0_20], %36 {strides = array<i32>} : memref<2x8xf32, #tpu.memory_space<vmem>>, vector<2x8xf32>,
    return
  }
  func.func @transform_0(%arg0: i32) -> (i32, i32) {
    %c0_i32 = arith.constant 0 : i32
    %c0_i32_0 = arith.constant 0 : i32
    return %arg0, %c0_i32 : i32, i32
  }
  func.func @transform_1(%arg0: i32) -> (i32, i32, i32) {
    %c0_i32 = arith.constant 0 : i32
    %c0_i32_0 = arith.constant 0 : i32
    %c0_i32_1 = arith.constant 0 : i32
    return %c0_i32, %arg0, %c0_i32_0 : i32, i32, i32
  }
  func.func @transform_2(%arg0: i32) -> (i32, i32) {
    %c0_i32 = arith.constant 0 : i32
    %c0_i32_0 = arith.constant 0 : i32
    %c0_i32_1 = arith.constant 0 : i32
    return %c0_i32, %c0_i32_0 : i32, i32
  }
  func.func @transform_3(%arg0: i32) -> (i32, i32) {
    %c0_i32 = arith.constant 0 : i32
    %c0_i32_0 = arith.constant 0 : i32
    %c0_i32_1 = arith.constant 0 : i32
    return %c0_i32, %c0_i32_0 : i32, i32
  }
  func.func @transform_4(%arg0: i32) -> (i32, i32) {
    %c0_i32 = arith.constant 0 : i32
    %c0_i32_0 = arith.constant 0 : i32
    %c0_i32_1 = arith.constant 0 : i32
    return %c0_i32, %c0_i32_0 : i32, i32
  }
  func.func @transform_5(%arg0: i32) -> (i32, i32) {
    %c0_i32 = arith.constant 0 : i32
    %c0_i32_0 = arith.constant 0 : i32
    %c0_i32_1 = arith.constant 0 : i32
    return %c0_i32, %c0_i32_0 : i32, i32
  }
  func.func @transform_6(%arg0: i32) -> (i32, i32) {
    %c0_i32 = arith.constant 0 : i32
    %c0_i32_0 = arith.constant 0 : i32
    return %arg0, %c0_i32 : i32, i32
  }
}

</mosaic_0001>

<bundles_post_ra>
// kernel: tpu_custom_call.1
= control target key start
LH: loop header
LB: loop body
LE: loop exit
PB: predicated region body
PF: predicated region fallthrough
CT: control target
= control target key end

     0   :  { %11 = vsyncpa [#allocation4], 0  ;;  %s838_s0 = inlined_call_operand.hbm [shape: f32[2,32], index: 0, kind: input, shape index: {}]   ;;  %s839_s1 = inlined_call_operand.hbm [shape: f32[8,2,32], index: 1, kind: input, shape index: {}]   ;;  %s840_s2 = inlined_call_operand.hbm [shape: f32[32,32], index: 2, kind: input, shape index: {}]   ;;  %s841_s3 = inlined_call_operand.hbm [shape: f32[32,32], index: 3, kind: input, shape index: {}]   ;;  %s842_s4 = inlined_call_operand.vmem [shape: f32[1,32], index: 4, kind: input, shape index: {}]   ;;  %s843_s5 = inlined_call_operand.vmem [shape: f32[1,32], index: 5, kind: input, shape index: {}]   ;;  %s844_s6 = inlined_call_operand.hbm [shape: f32[2,8], index: 6, kind: output, shape index: {}]  }
   0x1   :  { %12 = vsyncpa [#allocation7], 0 }
   0x2   :  { %13 = vsyncpa [#allocation10], 0 }
   0x3   :  { %14 = vsyncpa [#allocation5], 0  ;;  %s707_s21 = smov [#allocation6]   ;;  %s589_s25 = scalar_lea.hbm %s839_s1, 256 }
   0x4   :  { %s30_s22 = sshll.u32 %s707_s21, 4  ;;  %p590_p0 = scmp.ne.s32.totalorder %s839_s1, %s589_s25  ;;  %s31_s22 = int_to_ptr.vmem [resolvable:$true] %s30_s22 }
   0x5   :  { %p593_p1 = scmp.lt.u32.totalorder %s589_s25, %s839_s1 }
   0x7   :  { %p595_p2 = pnand %p593_p1, %p590_p0 }
   0x9   :  { %598 = shalt.err (!%p595_p2)
}
   0xa   :  { %s599_s30 = scalar_lea.vmem %s31_s22, 256  ;;  %p604_p4 = scmp.lt.s32.totalorder %s31_s22, %s31_s22 }
   0xb   :  { %p600_p3 = scmp.ne.s32.totalorder %s31_s22, %s599_s30  ;;  %p605_p5 = scmp.lt.s32.totalorder %s599_s30, %s599_s30 }
   0xd   :  { %p606_p6 = por %p605_p5, %p604_p4 }
   0xf   :  { %p607_p7 = pnand %p606_p6, %p600_p3 }
  0x11   :  { %610 = shalt.err (!%p607_p7)
}
  0x12   :  { %s708_s7 = smov 32   ;;  %s709_s8 = smov 2  }
  0x13   :  { %36 = dma.hbm_to_vmem [thread:$0]  %s839_s1, 256, %s31_s22, [#allocation7], %s708_s7, %s708_s7, %s709_s8  }
  0x14   :  { %s710_s11 = smov [#allocation3]   ;;  %s711_s13 = smov [#allocation8]  }
  0x15   :  { %s21_s12 = sshll.u32 %s710_s11, 4  ;;  %s42_s14 = sshll.u32 %s711_s13, 4  ;;  %s22_s12 = int_to_ptr.vmem [resolvable:$true] %s21_s12  ;;  %s43_s14 = int_to_ptr.vmem [resolvable:$true] %s42_s14 }
  0x16   :  { %s611_s17 = scalar_lea.hbm %s838_s0, 32 }
  0x17   :  { %p612_p8 = scmp.ne.s32.totalorder %s838_s0, %s611_s17  ;;  %p615_p9 = scmp.lt.u32.totalorder %s611_s17, %s838_s0 }
  0x19   :  { %p617_p10 = pnand %p615_p9, %p612_p8 }
  0x1b   :  { %620 = shalt.err (!%p617_p10)
}
  0x1c   :  { %s621_s1 = scalar_lea.vmem %s22_s12, 32  ;;  %p626_p12 = scmp.lt.s32.totalorder %s22_s12, %s22_s12 }
  0x1d   :  { %p622_p11 = scmp.ne.s32.totalorder %s22_s12, %s621_s1  ;;  %p627_p13 = scmp.lt.s32.totalorder %s621_s1, %s621_s1 }
  0x1f   :  { %p628_p0 = por %p627_p13, %p626_p12 }
  0x21   :  { %p629_p1 = pnand %p628_p0, %p622_p11 }
  0x23   :  { %632 = shalt.err (!%p629_p1)
}
  0x24   :  { %24 = dma.hbm_to_vmem [thread:$0]  %s838_s0, 32, %s22_s12, [#allocation4]  }
  0x25   :  { %s633_s26 = scalar_lea.hbm %s840_s2, 512 }
  0x26   :  { %p634_p2 = scmp.ne.s32.totalorder %s840_s2, %s633_s26  ;;  %p637_p3 = scmp.lt.u32.totalorder %s633_s26, %s840_s2 }
  0x28   :  { %p639_p4 = pnand %p637_p3, %p634_p2 }
  0x2a   :  { %642 = shalt.err (!%p639_p4)
}
  0x2b   :  { %s643_s7 = scalar_lea.vmem %s43_s14, 512  ;;  %p648_p6 = scmp.lt.s32.totalorder %s43_s14, %s43_s14 }
  0x2c   :  { %p644_p5 = scmp.ne.s32.totalorder %s43_s14, %s643_s7  ;;  %p649_p7 = scmp.lt.s32.totalorder %s643_s7, %s643_s7 }
  0x2e   :  { %p650_p8 = por %p649_p7, %p648_p6 }
  0x30   :  { %p651_p9 = pnand %p650_p8, %p644_p5 }
  0x32   :  { %654 = shalt.err (!%p651_p9)
}
  0x33   :  { %s712_s0 = smov 128   ;;  %s713_s8 = smov 8  }
  0x34   :  { %48 = dma.hbm_to_vmem [thread:$0]  %s840_s2, 512, %s43_s14, [#allocation7], %s712_s0, %s712_s0, %s713_s8  }
  0x35   :  { %s714_s11 = smov [#allocation9]   ;;  %s655_s16 = scalar_lea.hbm %s841_s3, 512 }
  0x36   :  { %s54_s12 = sshll.u32 %s714_s11, 4  ;;  %p656_p10 = scmp.ne.s32.totalorder %s841_s3, %s655_s16  ;;  %s55_s12 = int_to_ptr.vmem [resolvable:$true] %s54_s12 }
  0x37   :  { %p659_p11 = scmp.lt.u32.totalorder %s655_s16, %s841_s3 }
  0x39   :  { %p661_p12 = pnand %p659_p11, %p656_p10 }
  0x3b   :  { %664 = shalt.err (!%p661_p12)
}
  0x3c   :  { %s665_s21 = scalar_lea.vmem %s55_s12, 512  ;;  %p670_p0 = scmp.lt.s32.totalorder %s55_s12, %s55_s12 }
  0x3d   :  { %p666_p13 = scmp.ne.s32.totalorder %s55_s12, %s665_s21  ;;  %p671_p1 = scmp.lt.s32.totalorder %s665_s21, %s665_s21 }
  0x3f   :  { %p672_p2 = por %p671_p1, %p670_p0 }
  0x41   :  { %p673_p3 = pnand %p672_p2, %p666_p13 }
  0x43   :  { %676 = shalt.err (!%p673_p3)
}
  0x44   :  { %60 = dma.hbm_to_vmem [thread:$0]  %s841_s3, 512, %s55_s12, [#allocation10], %s712_s0, %s712_s0, %s713_s8  }
  0x45   :  { %699 = dma.done.wait [#allocation4], 32  }
  0x46   :  { %700 = vsyncadd [#allocation4], 4294967264 }
  0x47   :  { %701 = dma.done.wait [#allocation7], 768  }
  0x48   :  { %702 = vsyncadd [#allocation7], 4294966528 }
  0x49   :  { %703 = dma.done.wait [#allocation10], 512  }
  0x4a   :  { %704 = vsyncadd [#allocation10], 4294966784  ;;  %v715_v0 = vmov 0.0|0.0   ;;  %vm716_vm0 = vmmov 0   ;;  %v717_v1 = vmov 0.0   ;;  %v191_v2 = vlaneseq  ;;  %v163_v7 = vld [vmem:[#allocation9] sm:$0xff] }
  0x4b   :  { %558 = vmatprep.subr.bf16.mxu0 %v715_v0  ;;  %544 = vmatprep.mubr.msk.f32.mxu0 %vm716_vm0, %v717_v1  ;;  %v718_v3 = vmov 1983009808   ;;  %v164_v8 = vld [vmem:[#allocation9 + $0x8] sm:$0xff]  ;;  %v78_v9 = vld [vmem:[#allocation8] sm:$0xff]  ;;  %v165_v12 = vld [vmem:[#allocation9 + $0x10] sm:$0xff]  ;;  %vm89_vm1 = vcmask 261120  }
  0x4c   :  { %v189_v4 = vunpack.c.l.s4 %v718_v3  ;;  %v804_v6 = vshrl.u32 %v191_v2, 7  ;;  %v564_v10 = vpack.c.bf16 %v164_v8, %v163_v7  ;;  %v79_v11 = vld [vmem:[#allocation8 + $0x8] sm:$0xff]  ;;  %v166_v13 = vld [vmem:[#allocation9 + $0x18] sm:$0xff]  ;;  %v80_v16 = vld [vmem:[#allocation8 + $0x10] sm:$0xff]  ;;  %vm373_vm2 = vcmask 254976  }
  0x4d   :  { %v559_v14 = vpack.c.bf16 %v79_v11, %v78_v9  ;;  %v568_v15 = vpack.c.bf16 %v166_v13, %v165_v12  ;;  %v81_v17 = vld [vmem:[#allocation8 + $0x18] sm:$0xff]  ;;  %v170_v18 = vld [vmem:[#allocation6] sm:$0x3]  ;;  %v171_v20 = vld [vmem:[#allocation6 + $0x2] sm:$0x3]  ;;  %vm440_vm3 = vcmask 1041409  }
  0x4e   :  { %v190_v5 = vunpack.c.0.s8 %v189_v4  ;;  %565 = vmatprep.subr.bf16.mxu1 %v564_v10  ;;  %v172_v21 = vld [vmem:[#allocation6 + $0x4] sm:$0x3]  ;;  %v173_v22 = vld [vmem:[#allocation6 + $0x6] sm:$0x3]  ;;  %v562_v23 = vpack.c.bf16 %v81_v17, %v80_v16  ;;  %v186_v24 = vcombine.low %v170_v18, %v171_v20  ;;  %v174_v26 = vld [vmem:[#allocation6 + $0x8] sm:$0x3] }
  0x4f   :  { %560 = vmatpush3.bf16.msra.mxu0 %v559_v14  ;;  %567 = vmatpush3.bf16.msra.mxu1 %v564_v10  ;;  %v187_v25 = vcombine.low %v172_v21, %v173_v22  ;;  %v175_v27 = vld [vmem:[#allocation6 + $0xa] sm:$0x3]  ;;  %v176_v28 = vld [vmem:[#allocation6 + $0xc] sm:$0x3]  ;;  %v177_v29 = vld [vmem:[#allocation6 + $0xe] sm:$0x3] }
  0x50   :  { %v193_v19 = vsub.s32 %v190_v5, %v804_v6  ;;  %561 = vmatprep.subr.bf16.mxu0 %v715_v0  ;;  %569 = vmatprep.subr.bf16.mxu1 %v568_v15  ;;  %v203_v30 = vcombine.low %v174_v26, %v175_v27  ;;  %v204_v33 = vcombine.low %v176_v28, %v177_v29  ;;  %v77_v36 = vld [vmem:[#allocation3] sm:$0x3]  ;;  %v520_v39 = vld [vmem:[%s842_s4] ss:$0 sm:$0xff]  ;;  %v407_v26 = vand.u32 127, %v191_v2  ;;  %s719_s4 = smov [#allocation11]  }
  0x51   :  { %v524_v56 = vld [vmem:[%s843_s5] ss:$0 sm:$0xff]  ;;  %vm442_vm4 = vcmask 1042434   ;;  %vm444_vm5 = vcmask 1043459   ;;  %vm446_vm6 = vcmask 1044484   ;;  %vm448_vm7 = vcmask 1045509  }
  0x52   :  { %v194_v31 = vrot.slane %v186_v24, %v193_v19  ;;  %v201_v32 = vrot.slane %v187_v25, %v193_v19  ;;  %v211_v34 = vrot.slane %v203_v30, %v193_v19  ;;  %v218_v37 = vrot.slane %v204_v33, %v193_v19  ;;  %s509_s5 = sshll.u32 %s719_s4, 4  ;;  %s510_s5 = int_to_ptr.vmem [resolvable:$true] %s509_s5 }
  0x53   :  { %563 = vmatpush3.bf16.msra.mxu0 %v562_v23  ;;  %571 = vmatpush3.bf16.msra.mxu1 %v568_v15  ;;  %v410_v29 = vsub.s32 %v407_v26, %v804_v6  ;;  %vm450_vm8 = vcmask 1046534   ;;  %vm452_vm9 = vcmask 1047559   ;;  %vm455_vm10 = vcmask 15360   ;;  %s677_s24 = scalar_lea.vmem %s510_s5, 32  ;;  %p682_p5 = scmp.lt.s32.totalorder %s510_s5, %s510_s5 }
  0x54   :  { %v202_v35 = vcombine.low %v194_v31, %v201_v32  ;;  %v219_v38 = vcombine.low %v211_v34, %v218_v37  ;;  %vm490_vm11 = vcmask 58368   ;;  %p678_p4 = scmp.ne.s32.totalorder %s510_s5, %s677_s24  ;;  %p683_p6 = scmp.lt.s32.totalorder %s677_s24, %s677_s24 }
  0x56   :  { %555 = vmatprep.mubr.msk.f32.mxu1 %vm89_vm1, %v202_v35  ;;  %545 = vmatmul.mubr.msk.f32.vlgmr.msra.gmra.mrb[0].mxu0 %vm89_vm1, %v77_v36  ;;  %p684_p7 = por %p683_p6, %p682_p5 }
  0x57   :  { %556 = vmatmul.mubr.msk.f32.vlgmr.msra.gmra.mrb[0].mxu1 %vm89_vm1, %v219_v38 }
  0x58   :  { %p685_p8 = pnand %p684_p7, %p678_p4 }
 0x129   :  { %v159_v40 = vpop.f32.mrb[0].mxu0 }
 0x12a   :  { %v160_v41 = vadd.f32 %v520_v39, %v159_v40  ;;  %v557_v42 = vpop.f32.mrb[0].mxu1  ;;  %v546_v43 = vpop.f32.mrb[1].mxu0 }
 0x12b   :  { %v318_v44 = vcombine.high %v557_v42, %v557_v42  ;;  %v325_v45 = vrot.slane %v557_v42, %v193_v19  ;;  %v290_v46 = vpop.f32.mrb[1].mxu1 }
 0x12c   :  { %v301_v47 = vcombine.high %v290_v46, %v290_v46  ;;  %v308_v48 = vrot.slane %v290_v46, %v193_v19 }
 0x12d   :  { %v332_v49 = vrot.slane %v318_v44, %v193_v19  ;;  %v333_v50 = vcombine.high %v325_v45, %v325_v45  ;;  %v347_v51 = vadd.f32 %v325_v45, %v160_v41 }
 0x12e   :  { %v315_v52 = vrot.slane %v301_v47, %v193_v19  ;;  %v316_v53 = vcombine.high %v308_v48, %v308_v48  ;;  %v343_v54 = vadd.f32 %v308_v48, %v160_v41 }
 0x12f   :  { %v334_v55 = vcombine.high %v332_v49, %v332_v49  ;;  %v348_v57 = vadd.f32 %v333_v50, %v160_v41  ;;  %v349_v58 = vadd.f32 %v332_v49, %v160_v41  ;;  %v355_v8 = vmax.f32 %v347_v51, 0.0 }
 0x130   :  { %v317_v59 = vcombine.high %v315_v52, %v315_v52  ;;  %v344_v60 = vadd.f32 %v316_v53, %v160_v41  ;;  %v345_v61 = vadd.f32 %v315_v52, %v160_v41  ;;  %v351_v62 = vmax.f32 %v343_v54, 0.0 }
 0x131   :  { %v356_v63 = vmax.f32 %v348_v57, 0.0  ;;  %v350_v0 = vadd.f32 %v334_v55, %v160_v41  ;;  %v369_v15 = vmul.f32 %v524_v56, %v355_v8  ;;  %v357_v16 = vmax.f32 %v349_v58, 0.0 }
 0x132   :  { %v365_v1 = vmul.f32 %v524_v56, %v351_v62  ;;  %v352_v3 = vmax.f32 %v344_v60, 0.0  ;;  %v353_v4 = vmax.f32 %v345_v61, 0.0  ;;  %v346_v5 = vadd.f32 %v317_v59, %v160_v41 }
 0x133   :  { %v370_v7 = vmul.f32 %v524_v56, %v356_v63  ;;  %v358_v19 = vmax.f32 %v350_v0, 0.0  ;;  %v386_v20 = vsel %vm373_vm2, %v369_v15, 0.0  ;;  %v371_v21 = vmul.f32 %v524_v56, %v357_v16 }
 0x134   :  { %v374_v9 = vsel %vm373_vm2, %v365_v1, 0.0  ;;  %v366_v10 = vmul.f32 %v524_v56, %v352_v3  ;;  %v367_v12 = vmul.f32 %v524_v56, %v353_v4  ;;  %v354_v13 = vmax.f32 %v346_v5, 0.0 }
 0x135   :  { %375 = vadd.xlane.f32.xlu0 %v374_v9  ;;  %v389_v11 = vsel %vm373_vm2, %v370_v7, 0.0  ;;  %v372_v23 = vmul.f32 %v524_v56, %v358_v19  ;;  %v392_v24 = vsel %vm373_vm2, %v371_v21, 0.0 }
 0x136   :  { %390 = vadd.xlane.f32.xlu1 %v389_v11  ;;  %v377_v14 = vsel %vm373_vm2, %v366_v10, 0.0  ;;  %v380_v17 = vsel %vm373_vm2, %v367_v12, 0.0  ;;  %v368_v18 = vmul.f32 %v524_v56, %v354_v13 }
 0x137   :  { %v395_v25 = vsel %vm373_vm2, %v372_v23, 0.0 }
 0x138   :  { %v383_v22 = vsel %vm373_vm2, %v368_v18, 0.0 }
 0x139   :  { %378 = vadd.xlane.f32.xlu0 %v377_v14 }
 0x13a   :  { %381 = vadd.xlane.f32.xlu1 %v380_v17 }
 0x13d   :  { %387 = vadd.xlane.f32.xlu0 %v386_v20 }
 0x13e   :  { %384 = vadd.xlane.f32.xlu1 %v383_v22 }
 0x141   :  { %393 = vadd.xlane.f32.xlu0 %v392_v24 }
 0x142   :  { %396 = vadd.xlane.f32.xlu1 %v395_v25 }
 0x1c2   :  { %v376_v27 = vpop.xlane.xlu0 %375 }
 0x1c3   :  { %v391_v28 = vpop.xlane.xlu1 %390  ;;  %v411_v33 = vrot.slane %v376_v27, %v410_v29 }
 0x1c4   :  { %v431_v2 = vrot.slane %v391_v28, %v410_v29 }
 0x1c6   :  { %v379_v30 = vpop.xlane.xlu0 %378 }
 0x1c7   :  { %v415_v31 = vrot.slane %v379_v30, %v410_v29  ;;  %v382_v32 = vpop.xlane.xlu1 %381 }
 0x1c8   :  { %v419_v34 = vrot.slane %v382_v32, %v410_v29 }
 0x1c9   :  { %v441_v35 = vsel %vm440_vm3, %v415_v31, %v411_v33 }
 0x1ca   :  { %v388_v36 = vpop.xlane.xlu0 %387  ;;  %v443_v39 = vsel %vm442_vm4, %v419_v34, %v441_v35 }
 0x1cb   :  { %v385_v37 = vpop.xlane.xlu1 %384  ;;  %v427_v40 = vrot.slane %v388_v36, %v410_v29 }
 0x1cc   :  { %v423_v38 = vrot.slane %v385_v37, %v410_v29 }
 0x1ce   :  { %v445_v41 = vsel %vm444_vm5, %v423_v38, %v443_v39  ;;  %v394_v6 = vpop.xlane.xlu0 %393 }
 0x1cf   :  { %v447_v42 = vsel %vm446_vm6, %v427_v40, %v445_v41  ;;  %v435_v43 = vrot.slane %v394_v6, %v410_v29  ;;  %v397_v44 = vpop.xlane.xlu1 %396 }
 0x1d0   :  { %v449_v45 = vsel %vm448_vm7, %v431_v2, %v447_v42  ;;  %v439_v46 = vrot.slane %v397_v44, %v410_v29 }
 0x1d1   :  { %v451_v47 = vsel %vm450_vm8, %v435_v43, %v449_v45 }
 0x1d2   :  { %v453_v48 = vsel %vm452_vm9, %v439_v46, %v451_v47 }
 0x1d3   :  { %456 = vst.msk [vmem:[#allocation2] sm:$0xff] %vm455_vm10, %v453_v48 }
 0x1da   :  { %v457_v49 = vld [vmem:[#allocation2] sm:$0xff] }
 0x1db   :  { %458 = vxpose.xlu0.b32.start.end [1/1] (short) (narrow) %v457_v49, 8 }
 0x25b   :  { %v474_v50 = vpop.trf.xlu0 }
 0x25c   :  { %v491_v51 = vsel %vm490_vm11, %v474_v50, -inf }
 0x25d   :  { %492 = vmax.xlane.f32.xlu1 %v491_v51 }
 0x2ea   :  { %v493_v52 = vpop.xlane.xlu1 %492 }
 0x2eb   :  { %v494_v53 = vsub.f32 %v474_v50, %v493_v52 }
 0x2ed   :  { %v495_v54 = vmul.f32 1.442695, %v494_v53 }
 0x2ef   :  { %585 = vpow2.f32 %v495_v54 }
 0x2f9   :  { %v586_v55 = vpop.eup %585 }
 0x2fa   :  { %v497_v56 = vsel %vm490_vm11, %v586_v55, 0.0 }
 0x2fb   :  { %498 = vadd.xlane.f32.xlu1 %v497_v56 }
 0x388   :  { %v499_v57 = vpop.xlane.xlu1 %498 }
 0x389   :  { %587 = vrcp.f32 %v499_v57 }
 0x393   :  { %v588_v58 = vpop.eup %587 }
 0x394   :  { %v501_v59 = vmul.f32 %v588_v58, %v586_v55 }
 0x396   :  { %502 = vst.msk [vmem:[#allocation11] sm:$0x3] %vm490_vm11, %v501_v59 }
 0x397   :  { %688 = shalt.err (!%p685_p8)
}
 0x398   :  { %s689_s27 = scalar_lea.hbm %s844_s6, 32 }
 0x399   :  { %p690_p9 = scmp.ne.s32.totalorder %s844_s6, %s689_s27  ;;  %p693_p10 = scmp.lt.u32.totalorder %s689_s27, %s844_s6 }
 0x39b   :  { %p695_p11 = pnand %p693_p10, %p690_p9 }
 0x39d   :  { %698 = shalt.err (!%p695_p11)
}
 0x39e   :  { %512 = dma.vmem_to_hbm [thread:$0]  %s510_s5, 32, %s844_s6, [#allocation5]  }
 0x39f   :  { %705 = dma.done.wait [#allocation5], 32  }
 0x3a0   :  { %706 = vsyncadd [#allocation5], 4294967264 }
 0x3a1   :  { %516 = vsyncpa [#allocation4], 1 }
 0x3a2   :  { %517 = vsyncpa [#allocation7], 1 }
 0x3a3   :  { %518 = vsyncpa [#allocation10], 1 }
 0x3a4   :  { %519 = vsyncpa [#allocation5], 1 }

</bundles_post_ra>
